<compile_context>
chip_gen: v7x
topology: tpu7x:2x2x1
jax: 0.10.0
libtpu: 0.0.40
codegen_flags: <defaults>
</compile_context>

<pallas_src>
import functools

import jax
import jax.numpy as jnp
from jax.experimental import pallas as pl
from jax.experimental.pallas import tpu as pltpu

# torchvision rgb_to_grayscale weights
_GRAY_R, _GRAY_G, _GRAY_B = 0.2989, 0.587, 0.114

_LANES = 128
_BLOCK_BUDGET_BYTES = 2 << 20   # per-step I/O block target (~85% of HBM roofline at 2-4 MiB)
_MIN_GRID_STEPS = 8             # keep DMA hidden across both v7x TensorCores


def _color_jitter_kernel(bsc_ref, img_ref, out_ref, *, pix_rows, inv_count):
    """One grid step processes NB images laid out as (NB, 3*pix_rows, 128).

    Channel k occupies sublane rows [k*pix_rows, (k+1)*pix_rows). Math is f32; storage
    follows out_ref.dtype. inv_count = 1 / (true pixel count), so zero-padded pixels do
    not perturb the per-image contrast mean (they stay exactly 0 through brightness and
    saturation and are sliced off in the wrapper).
    """
    b = bsc_ref[0]                 # brightness factor
    s = bsc_ref[1]                 # saturation factor
    c = bsc_ref[2]                 # contrast factor
    one_minus_s = 1.0 - s          # hoisted scalar algebra
    one_minus_c = 1.0 - c
    P = pix_rows

    x = img_ref[...]
    if x.dtype != jnp.float32:     # skip the cast when I/O is already f32
        x = x.astype(jnp.float32)

    # adjust_brightness: blend(img, 0, b) = clamp(b*img, 0, 1); img >= 0 and b > 0 make
    # the lower clamp dead -> single minimum.
    x = jnp.minimum(x * b, 1.0)

    xr = x[:, 0 * P:1 * P, :]
    xg = x[:, 1 * P:2 * P, :]
    xb = x[:, 2 * P:3 * P, :]

    # adjust_saturation: blend(img, rgb_to_grayscale(img), s)
    gray_s = one_minus_s * (_GRAY_R * xr + _GRAY_G * xg + _GRAY_B * xb)   # (NB, P, 128)
    xr = jnp.clip(s * xr + gray_s, 0.0, 1.0)
    xg = jnp.clip(s * xg + gray_s, 0.0, 1.0)
    xb = jnp.clip(s * xb + gray_s, 0.0, 1.0)

    # adjust_contrast: blend(img, mean(rgb_to_grayscale(img)) per image, c)
    # mean(gray) = sum_k w_k * mean(channel_k): no full-size gray temporary, channel
    # sums only (zero padding contributes nothing; divide by the true pixel count).
    m = (_GRAY_R * jnp.sum(xr, axis=(1, 2), keepdims=True)
         + _GRAY_G * jnp.sum(xg, axis=(1, 2), keepdims=True)
         + _GRAY_B * jnp.sum(xb, axis=(1, 2), keepdims=True)) * inv_count  # (NB, 1, 1)
    bias = one_minus_c * m                                                  # hoisted
    xr = jnp.clip(c * xr + bias, 0.0, 1.0)
    xg = jnp.clip(c * xg + bias, 0.0, 1.0)
    xb = jnp.clip(c * xb + bias, 0.0, 1.0)

    y = jnp.concatenate([xr, xg, xb], axis=1)        # (NB, 3P, 128): one dense lane-wide store
    out_ref[...] = y.astype(out_ref.dtype)


def _choose_images_per_block(n, img_bytes):
    """Largest NB s.t. the I/O block stays under ~2 MiB, NB | n, and (when the batch
    allows) at least _MIN_GRID_STEPS grid steps remain."""
    nb_vmem = max(1, _BLOCK_BUDGET_BYTES // img_bytes)
    nb_steps = max(1, n // _MIN_GRID_STEPS)
    nb_target = int(min(n, nb_vmem, nb_steps))
    for nb in range(nb_target, 0, -1):
        if n % nb == 0:
            return nb
    return 1


def _vmem_limit_bytes(block_io_bytes, block_f32_bytes):
    try:
        vmem_cap = int(pltpu.get_tpu_info().vmem_capacity_bytes)
    except Exception:
        vmem_cap = 64 << 20          # v7x has the smallest VMEM of current chips
    # 2x double-buffered in + out blocks (I/O dtype) + ~4 blocks of live f32
    # temporaries (x / channel slabs / clip temps) + headroom, clamped to physical VMEM.
    need = 4 * block_io_bytes + 4 * block_f32_bytes + (4 << 20)
    return int(min(vmem_cap - (4 << 20), max(32 << 20, need)))


def color_jitter(img, depth, key,
                 brightness=(0.9, 1.1), saturation=(0.9, 1.1), contrast=(0.9, 1.1),
                 donate_img=False):
    """JAX/Pallas equivalent of ColorJitter.forward(img, depth).

    img: (N, 3, H, W), values in [0, 1]. depth is returned unchanged (the reference
    module does no compute on it). Storage dtype is the caller's dtype (no wrapper-side
    casts); in-kernel math is f32.
    """
    N, C, H, W = img.shape
    assert C == 3, "ColorJitter expects RGB images (C == 3)"

    # Random jitter factors (torch RNG in the reference; jax.random here).
    kb, ks, kc = jax.random.split(key, 3)
    b = jax.random.uniform(kb, (), jnp.float32, brightness[0], brightness[1])
    s = jax.random.uniform(ks, (), jnp.float32, saturation[0], saturation[1])
    c = jax.random.uniform(kc, (), jnp.float32, contrast[0], contrast[1])
    bsc = jnp.stack([b, s, c]).astype(jnp.float32)           # (3,) -> SMEM prefetch

    io_dtype = img.dtype
    HW = H * W
    P = pl.cdiv(HW, _LANES)                                   # pixel rows per channel
    HWp = P * _LANES

    # Lane-dense, sublane-packed layout: (N, 3*P, 128). Channels are folded into the
    # sublane axis; H*W is zero-padded up to a lane multiple (the kernel mean divides
    # by the true pixel count, and padded pixels are sliced off afterwards).
    x = img.reshape(N, C, HW)
    if HWp != HW:
        x = jnp.pad(x, ((0, 0), (0, 0), (0, HWp - HW)))
    x = x.reshape(N, C * P, _LANES)

    img_bytes = C * P * _LANES * jnp.dtype(io_dtype).itemsize
    NB = _choose_images_per_block(N, img_bytes)
    block_io_bytes = NB * img_bytes
    block_f32_bytes = NB * C * P * _LANES * 4
    vmem_limit = _vmem_limit_bytes(block_io_bytes, block_f32_bytes)
    # TODO(synk): images too large to whole-image buffer in VMEM (notably on v7x's
    # 64 MiB) need a spatially-tiled two-pass variant (pass 1: brightness+saturation +
    # channel-sum accumulation over an "arbitrary" axis; pass 2: contrast).

    kernel = functools.partial(_color_jitter_kernel, pix_rows=P, inv_count=1.0 / float(HW))
    grid = (N // NB,)
    out = pl.pallas_call(
        kernel,
        out_shape=jax.ShapeDtypeStruct((N, C * P, _LANES), io_dtype),
        grid_spec=pltpu.PrefetchScalarGridSpec(
            num_scalar_prefetch=1,
            grid=grid,
            in_specs=[pl.BlockSpec((NB, C * P, _LANES), lambda n, bsc_ref: (n, 0, 0))],
            out_specs=pl.BlockSpec((NB, C * P, _LANES), lambda n, bsc_ref: (n, 0, 0)),
        ),
        compiler_params=pltpu.CompilerParams(
            dimension_semantics=("parallel",),
            vmem_limit_bytes=vmem_limit,
        ),
        # img (input index 1, after the scalar-prefetch operand) may alias the output to
        # avoid a second N*3*H*W HBM allocation when the caller donates the image.
        input_output_aliases=({1: 0} if donate_img else {}),
    )(bsc, x)

    out = out.reshape(N, C, HWp)
    if HWp != HW:
        out = out[:, :, :HW]
    out = out.reshape(N, C, H, W)
    # depth is returned untouched (no compute in the reference module).
    return out, depth


def _ref_color_jitter(img, key,
                      brightness=(0.9, 1.1), saturation=(0.9, 1.1), contrast=(0.9, 1.1)):
    """Pure-JAX reference using the same RNG draws as color_jitter()."""
    kb, ks, kc = jax.random.split(key, 3)
    b = jax.random.uniform(kb, (), jnp.float32, brightness[0], brightness[1])
    s = jax.random.uniform(ks, (), jnp.float32, saturation[0], saturation[1])
    c = jax.random.uniform(kc, (), jnp.float32, contrast[0], contrast[1])
    x = jnp.clip(img.astype(jnp.float32) * b, 0.0, 1.0)
    gray = _GRAY_R * x[:, 0:1] + _GRAY_G * x[:, 1:2] + _GRAY_B * x[:, 2:3]
    x = jnp.clip(s * x + (1.0 - s) * gray, 0.0, 1.0)
    gray2 = _GRAY_R * x[:, 0:1] + _GRAY_G * x[:, 1:2] + _GRAY_B * x[:, 2:3]
    m = jnp.mean(gray2, axis=(1, 2, 3), keepdims=True)
    x = jnp.clip(c * x + (1.0 - c) * m, 0.0, 1.0)
    return x.astype(img.dtype)


if __name__ == "__main__":
    key = jax.random.PRNGKey(0)
    k_img, k_depth, k_jit = jax.random.split(key, 3)

    # Case 1: H*W is a lane multiple (no padding path).
    N, C, H, W = 2, 3, 16, 16
    img = jax.random.uniform(k_img, (N, C, H, W), jnp.float32)          # RGB in [0, 1]
    depth = jax.random.uniform(k_depth, (N, 1, H, W), jnp.float32)      # pass-through

    out_img, out_depth = color_jitter(img, depth, k_jit)
    jax.block_until_ready(out_img)
    jax.block_until_ready(out_depth)

    assert out_img.shape == img.shape and out_img.dtype == img.dtype
    assert out_depth.shape == depth.shape
    ref = _ref_color_jitter(img, k_jit)
    assert bool(jnp.allclose(out_img, ref, atol=1e-5, rtol=1e-5)), "mismatch vs JAX ref"
    assert bool(jnp.all(out_depth == depth))

    # Case 2: H*W not a lane multiple (exercises the zero-padded lane-dense path).
    H2, W2 = 10, 20
    img2 = jax.random.uniform(jax.random.PRNGKey(1), (N, C, H2, W2), jnp.float32)
    depth2 = jnp.zeros((N, 1, H2, W2), jnp.float32)
    out_img2, _ = color_jitter(img2, depth2, k_jit)
    jax.block_until_ready(out_img2)
    ref2 = _ref_color_jitter(img2, k_jit)
    assert bool(jnp.allclose(out_img2, ref2, atol=1e-5, rtol=1e-5)), "mismatch (padded path)"

    print("KERNEL_OK")
</pallas_src>

<mosaic_0001>
module attributes {stable_mosaic.version = 11 : i64} {
  func.func @_color_jitter_kernel(%arg0: i32, %arg1: memref<3xf32, #tpu.memory_space<smem>>, %arg2: memref<1x6x128xf32, #tpu.memory_space<vmem>>, %arg3: memref<1x6x128xf32, #tpu.memory_space<vmem>>) attributes {dimension_semantics = [#tpu.dimension_semantics<parallel>], iteration_bounds = array<i64: 2>, scalar_prefetch = 1 : i64, scratch_operands = 0 : i64, tpu.core_type = #tpu.core_type<tc>, window_params = [{transform_indices = @transform_0, window_bounds = array<i64: 1, 6, 128>}, {transform_indices = @transform_1, window_bounds = array<i64: 1, 6, 128>}]} {
    %c0 = arith.constant 0 : index
    %0 = memref.load %arg1[%c0] : memref<3xf32, #tpu.memory_space<smem>>
    %c1 = arith.constant 1 : index
    %1 = memref.load %arg1[%c1] : memref<3xf32, #tpu.memory_space<smem>>
    %c2 = arith.constant 2 : index
    %2 = memref.load %arg1[%c2] : memref<3xf32, #tpu.memory_space<smem>>
    %cst = arith.constant 1.000000e+00 : f32
    %3 = arith.subf %cst, %1 : f32
    %cst_0 = arith.constant 1.000000e+00 : f32
    %4 = arith.subf %cst_0, %2 : f32
    %c0_1 = arith.constant 0 : index
    %c0_2 = arith.constant 0 : index
    %c0_3 = arith.constant 0 : index
    %5 = vector.load %arg2[%c0_1, %c0_2, %c0_3] : memref<1x6x128xf32, #tpu.memory_space<vmem>>, vector<1x6x128xf32>
    %6 = vector.broadcast %0 : f32 to vector<1x6x128xf32>
    %7 = arith.mulf %5, %6 : vector<1x6x128xf32>
    %cst_4 = arith.constant 1.000000e+00 : f32
    %8 = vector.broadcast %cst_4 : f32 to vector<1x6x128xf32>
    %9 = arith.minimumf %7, %8 : vector<1x6x128xf32>
    %10 = vector.extract_strided_slice %9 {offsets = [0, 0, 0], sizes = [1, 2, 128], strides = [1, 1, 1]} : vector<1x6x128xf32> to vector<1x2x128xf32>
    %11 = vector.extract_strided_slice %9 {offsets = [0, 2, 0], sizes = [1, 2, 128], strides = [1, 1, 1]} : vector<1x6x128xf32> to vector<1x2x128xf32>
    %12 = vector.extract_strided_slice %9 {offsets = [0, 4, 0], sizes = [1, 2, 128], strides = [1, 1, 1]} : vector<1x6x128xf32> to vector<1x2x128xf32>
    %cst_5 = arith.constant 2.989000e-01 : f32
    %13 = vector.broadcast %cst_5 : f32 to vector<1x2x128xf32>
    %14 = arith.mulf %13, %10 : vector<1x2x128xf32>
    %cst_6 = arith.constant 5.870000e-01 : f32
    %15 = vector.broadcast %cst_6 : f32 to vector<1x2x128xf32>
    %16 = arith.mulf %15, %11 : vector<1x2x128xf32>
    %17 = arith.addf %14, %16 : vector<1x2x128xf32>
    %cst_7 = arith.constant 1.140000e-01 : f32
    %18 = vector.broadcast %cst_7 : f32 to vector<1x2x128xf32>
    %19 = arith.mulf %18, %12 : vector<1x2x128xf32>
    %20 = arith.addf %17, %19 : vector<1x2x128xf32>
    %21 = vector.broadcast %3 : f32 to vector<1x2x128xf32>
    %22 = arith.mulf %21, %20 : vector<1x2x128xf32>
    %23 = vector.broadcast %1 : f32 to vector<1x2x128xf32>
    %24 = arith.mulf %23, %10 : vector<1x2x128xf32>
    %25 = arith.addf %24, %22 : vector<1x2x128xf32>
    %cst_8 = arith.constant 0.000000e+00 : f32
    %cst_9 = arith.constant 1.000000e+00 : f32
    %26 = vector.broadcast %cst_8 : f32 to vector<1x2x128xf32>
    %27 = arith.maximumf %26, %25 : vector<1x2x128xf32>
    %28 = vector.broadcast %cst_9 : f32 to vector<1x2x128xf32>
    %29 = arith.minimumf %28, %27 : vector<1x2x128xf32>
    %30 = vector.broadcast %1 : f32 to vector<1x2x128xf32>
    %31 = arith.mulf %30, %11 : vector<1x2x128xf32>
    %32 = arith.addf %31, %22 : vector<1x2x128xf32>
    %cst_10 = arith.constant 0.000000e+00 : f32
    %cst_11 = arith.constant 1.000000e+00 : f32
    %33 = vector.broadcast %cst_10 : f32 to vector<1x2x128xf32>
    %34 = arith.maximumf %33, %32 : vector<1x2x128xf32>
    %35 = vector.broadcast %cst_11 : f32 to vector<1x2x128xf32>
    %36 = arith.minimumf %35, %34 : vector<1x2x128xf32>
    %37 = vector.broadcast %1 : f32 to vector<1x2x128xf32>
    %38 = arith.mulf %37, %12 : vector<1x2x128xf32>
    %39 = arith.addf %38, %22 : vector<1x2x128xf32>
    %cst_12 = arith.constant 0.000000e+00 : f32
    %cst_13 = arith.constant 1.000000e+00 : f32
    %40 = vector.broadcast %cst_12 : f32 to vector<1x2x128xf32>
    %41 = arith.maximumf %40, %39 : vector<1x2x128xf32>
    %42 = vector.broadcast %cst_13 : f32 to vector<1x2x128xf32>
    %43 = arith.minimumf %42, %41 : vector<1x2x128xf32>
    %cst_14 = arith.constant dense<0.000000e+00> : vector<1xf32>
    %44 = vector.multi_reduction <add>, %29, %cst_14 [1, 2] : vector<1x2x128xf32> to vector<1xf32>
    %45 = vector.shape_cast %44 : vector<1xf32> to vector<1x1x1xf32>
    %cst_15 = arith.constant 2.989000e-01 : f32
    %46 = vector.broadcast %cst_15 : f32 to vector<1x1x1xf32>
    %47 = arith.mulf %46, %45 : vector<1x1x1xf32>
    %cst_16 = arith.constant dense<0.000000e+00> : vector<1xf32>
    %48 = vector.multi_reduction <add>, %36, %cst_16 [1, 2] : vector<1x2x128xf32> to vector<1xf32>
    %49 = vector.shape_cast %48 : vector<1xf32> to vector<1x1x1xf32>
    %cst_17 = arith.constant 5.870000e-01 : f32
    %50 = vector.broadcast %cst_17 : f32 to vector<1x1x1xf32>
    %51 = arith.mulf %50, %49 : vector<1x1x1xf32>
    %52 = arith.addf %47, %51 : vector<1x1x1xf32>
    %cst_18 = arith.constant dense<0.000000e+00> : vector<1xf32>
    %53 = vector.multi_reduction <add>, %43, %cst_18 [1, 2] : vector<1x2x128xf32> to vector<1xf32>
    %54 = vector.shape_cast %53 : vector<1xf32> to vector<1x1x1xf32>
    %cst_19 = arith.constant 1.140000e-01 : f32
    %55 = vector.broadcast %cst_19 : f32 to vector<1x1x1xf32>
    %56 = arith.mulf %55, %54 : vector<1x1x1xf32>
    %57 = arith.addf %52, %56 : vector<1x1x1xf32>
    %cst_20 = arith.constant 3.906250e-03 : f32
    %58 = vector.broadcast %cst_20 : f32 to vector<1x1x1xf32>
    %59 = arith.mulf %57, %58 : vector<1x1x1xf32>
    %60 = vector.broadcast %4 : f32 to vector<1x1x1xf32>
    %61 = arith.mulf %60, %59 : vector<1x1x1xf32>
    %62 = vector.broadcast %2 : f32 to vector<1x2x128xf32>
    %63 = arith.mulf %62, %29 : vector<1x2x128xf32>
    %64 = vector.broadcast %61 : vector<1x1x1xf32> to vector<1x2x128xf32>
    %65 = arith.addf %63, %64 : vector<1x2x128xf32>
    %cst_21 = arith.constant 0.000000e+00 : f32
    %cst_22 = arith.constant 1.000000e+00 : f32
    %66 = vector.broadcast %cst_21 : f32 to vector<1x2x128xf32>
    %67 = arith.maximumf %66, %65 : vector<1x2x128xf32>
    %68 = vector.broadcast %cst_22 : f32 to vector<1x2x128xf32>
    %69 = arith.minimumf %68, %67 : vector<1x2x128xf32>
    %70 = vector.broadcast %2 : f32 to vector<1x2x128xf32>
    %71 = arith.mulf %70, %36 : vector<1x2x128xf32>
    %72 = vector.broadcast %61 : vector<1x1x1xf32> to vector<1x2x128xf32>
    %73 = arith.addf %71, %72 : vector<1x2x128xf32>
    %cst_23 = arith.constant 0.000000e+00 : f32
    %cst_24 = arith.constant 1.000000e+00 : f32
    %74 = vector.broadcast %cst_23 : f32 to vector<1x2x128xf32>
    %75 = arith.maximumf %74, %73 : vector<1x2x128xf32>
    %76 = vector.broadcast %cst_24 : f32 to vector<1x2x128xf32>
    %77 = arith.minimumf %76, %75 : vector<1x2x128xf32>
    %78 = vector.broadcast %2 : f32 to vector<1x2x128xf32>
    %79 = arith.mulf %78, %43 : vector<1x2x128xf32>
    %80 = vector.broadcast %61 : vector<1x1x1xf32> to vector<1x2x128xf32>
    %81 = arith.addf %79, %80 : vector<1x2x128xf32>
    %cst_25 = arith.constant 0.000000e+00 : f32
    %cst_26 = arith.constant 1.000000e+00 : f32
    %82 = vector.broadcast %cst_25 : f32 to vector<1x2x128xf32>
    %83 = arith.maximumf %82, %81 : vector<1x2x128xf32>
    %84 = vector.broadcast %cst_26 : f32 to vector<1x2x128xf32>
    %85 = arith.minimumf %84, %83 : vector<1x2x128xf32>
    %86 = tpu.concatenate %69, %77, %85 in 1 : vector<1x2x128xf32>, vector<1x2x128xf32>, vector<1x2x128xf32> -> vector<1x6x128xf32>
    %c0_27 = arith.constant 0 : index
    %c0_28 = arith.constant 0 : index
    %c0_29 = arith.constant 0 : index
    %87 = vector.load %arg3[%c0_27, %c0_28, %c0_29] : memref<1x6x128xf32, #tpu.memory_space<vmem>>, vector<1x6x128xf32>
    tpu.vector_store %arg3[%c0_27, %c0_28, %c0_29], %86 {strides = array<i32>} : memref<1x6x128xf32, #tpu.memory_space<vmem>>, vector<1x6x128xf32>,
    return
  }
  func.func @transform_0(%arg0: i32, %arg1: memref<3xf32, #tpu.memory_space<smem>>) -> (i32, i32, i32) {
    %c0_i32 = arith.constant 0 : i32
    %c0_i32_0 = arith.constant 0 : i32
    %c0_i32_1 = arith.constant 0 : i32
    return %arg0, %c0_i32, %c0_i32_0 : i32, i32, i32
  }
  func.func @transform_1(%arg0: i32, %arg1: memref<3xf32, #tpu.memory_space<smem>>) -> (i32, i32, i32) {
    %c0_i32 = arith.constant 0 : i32
    %c0_i32_0 = arith.constant 0 : i32
    %c0_i32_1 = arith.constant 0 : i32
    return %arg0, %c0_i32, %c0_i32_0 : i32, i32, i32
  }
}

</mosaic_0001>

<bundles_post_ra>
// kernel: tpu_custom_call.1
= control target key start
LH: loop header
LB: loop body
LE: loop exit
PB: predicated region body
PF: predicated region fallthrough
CT: control target
= control target key end

     0   :  { %s358_s0 = inlined_call_operand.vmem [shape: f32[3], index: 0, kind: input, shape index: {}]   ;;  %s359_s1 = inlined_call_operand.vmem [shape: f32[2,6,128], index: 1, kind: input, shape index: {}]   ;;  %s360_s2 = inlined_call_operand.vmem [shape: f32[2,6,128], index: 2, kind: output, shape index: {}]  }
   0x1   :  { %s7_s11 = sshll.u32 %s358_s0, 4  ;;  %s8_s11 = int_to_ptr.vmem [resolvable:$true] %s7_s11 }
   0x2   :  { %s289_s12 = scalar_lea.vmem %s8_s11, 16  ;;  %p294_p1 = scmp.lt.s32.totalorder %s8_s11, %s8_s11 }
   0x3   :  { %p290_p0 = scmp.ne.s32.totalorder %s8_s11, %s289_s12  ;;  %p295_p2 = scmp.lt.s32.totalorder %s289_s12, %s289_s12 }
   0x5   :  { %p296_p3 = por %p295_p2, %p294_p1 }
   0x7   :  { %p297_p4 = pnand %p296_p3, %p290_p0 }
   0x9   :  { %300 = shalt.err (!%p297_p4)  }
   0xa   :  { %s311_s13 = smov [#allocation3]  }
   0xb   :  { %10 = dma.vmem_to_smem %s8_s11, 16, %s311_s13, [#allocation2] }
   0xc   :  { %305 = dma.done.wait [#allocation2], 16 }
   0xd   :  { %306 = vsyncadd [#allocation2], 4294967280 }
   0xe   :  { %12 = sfence }
   0xf   :  { %s330_s14 = smov 0  }
  0x10 LB: > { %s269_s0 = sadd.s32 4294967295, %s309_s14   ;;  %p273_p5 = scmp.ge.s32.totalorder %s309_s14, 1  ;;  %s309_s14 = sphi %s330_s14, %s18_s14  }
  0x11   : > { %p93_p6 = scmp.lt.s32.totalorder %s309_s14, 3 }
  0x13   : > { %p94_p7 = pnand %p273_p5, %p93_p6 }
  0x14   : > { %p111_p8 = scmp.lt.s32.totalorder (!%p94_p7), %s269_s0, 1  ;;  %s119_s15 = sld [smem:[#allocation3]] (!%p94_p7)  ;;  %vm157_vm0 = vcmask (!%p94_p7), 1041408   ;;  %vm213_vm1 = vcmask (!%p94_p7), 1043456  }
  0x15   : > { %97 = sbr.rel (%p94_p7) target bundleno = 230 (0xe6), region = 24  ;;  %s276_s17 = sld [smem:[#allocation3 + $0x1]] (!%p94_p7) }
  0x16   : > { %s277_s22 = sld [smem:[#allocation3 + $0x2]] (!%p94_p7) }
  0x1a   : > { %v125_v1 = vstv (!%p94_p7), %s119_s15 }
  0x1b   : > { %s122_s21 = ssub.f32 (!%p94_p7), 1.0, %s276_s17  ;;  %v141_v9 = vstv (!%p94_p7), %s276_s17 }
  0x1c   : > { %s362_s0 = smov (!%p111_p8, %s269_s0), 1  ;;  %s123_s23 = ssub.f32 1.0, %s277_s22  ;;  %v199_v56 = vstv %s277_s22 }
  0x1d   : > { %s274_s16 = sshll.u32 %s362_s0, 3  ;;  %v139_v11 = vstv %s122_s21 }
  0x1e   : > { %s114_s20 = scalar_lea.vmem %s359_s1, %s274_s16  ;;  %v197_v58 = vstv %s123_s23  ;;  %s118_s26 = scalar_lea.vmem %s360_s2, %s274_s16 }
  0x1f   : > { %v124_v0 = vld [vmem:[%s114_s20] sm:$0x3f] }
  0x20   : > { %v126_v2 = vmul.f32 %v125_v1, %v124_v0 }
  0x22   : > { %v127_v3 = vmin.f32 %v126_v2, 1.0 }
  0x24   : > { %v128_v4 = vmul.f32 0.2989, %v127_v3  ;;  %v129_v5 = vmul.f32 0.587, %v127_v3  ;;  %v134_v6 = vmul.f32 0.114, %v127_v3  ;;  %v142_v13 = vmul.f32 %v141_v9, %v127_v3 }
  0x26   : > { %v131_v7 = vrot.slane %v129_v5, 2  ;;  %v136_v8 = vrot.slane %v134_v6, 4 }
  0x28   : > { %v133_v10 = vadd.f32 %v131_v7, %v128_v4 }
  0x2a   : > { %v138_v12 = vadd.f32 %v136_v8, %v133_v10 }
  0x2c   : > { %v140_v14 = vmul.f32 %v139_v11, %v138_v12 }
  0x2e   : > { %v143_v15 = vadd.f32 %v142_v13, %v140_v14  ;;  %v152_v16 = vrot.slane %v140_v14, 4  ;;  %v147_v17 = vrot.slane %v140_v14, 6 }
  0x30   : > { %v144_v18 = vmax.f32 %v143_v15, 0.0  ;;  %v154_v19 = vadd.f32 %v152_v16, %v142_v13  ;;  %v149_v20 = vadd.f32 %v147_v17, %v142_v13 }
  0x32   : > { %v145_v21 = vmin.f32 %v144_v18, 1.0  ;;  %v155_v22 = vmax.f32 %v154_v19, 0.0  ;;  %v150_v23 = vmax.f32 %v149_v20, 0.0 }
  0x34   : > { %v158_v24 = vsel %vm157_vm0, %v145_v21, 0.0  ;;  %v156_v25 = vmin.f32 %v155_v22, 1.0  ;;  %v151_v26 = vmin.f32 %v150_v23, 1.0  ;;  %v200_v59 = vmul.f32 %v199_v56, %v145_v21 }
  0x35   : > { %159 = vadd.xlane.f32.xlu0 %v158_v24 }
  0x36   : > { %v183_v27 = vrot.slane %v156_v25, 4  ;;  %v169_v28 = vrot.slane %v151_v26, 2  ;;  %v208_v60 = vmul.f32 %v199_v56, %v156_v25  ;;  %v204_v61 = vmul.f32 %v199_v56, %v151_v26 }
  0x38   : > { %v185_v29 = vsel %vm157_vm0, %v183_v27, 0.0  ;;  %v171_v30 = vsel %vm157_vm0, %v169_v28, 0.0 }
  0x39   : > { %186 = vadd.xlane.f32.xlu1 %v185_v29  ;;  %172 = vadd.xlane.f32.xlu0 %v171_v30 }
  0xc2   : > { %v160_v31 = vpop.xlane.xlu0 %159 }
  0xc3   : > { %v161_v32 = vrot.slane %v160_v31, 4 }
  0xc5   : > { %v162_v33 = vadd.f32 %v161_v32, %v160_v31 }
  0xc6   : > { %v187_v34 = vpop.xlane.xlu1 %186  ;;  %v173_v35 = vpop.xlane.xlu0 %172 }
  0xc7   : > { %v163_v36 = vrot.slane %v162_v33, 2  ;;  %v188_v37 = vrot.slane %v187_v34, 4  ;;  %v174_v38 = vrot.slane %v173_v35, 4 }
  0xc9   : > { %v164_v39 = vadd.f32 %v163_v36, %v162_v33  ;;  %v189_v40 = vadd.f32 %v188_v37, %v187_v34  ;;  %v175_v41 = vadd.f32 %v174_v38, %v173_v35 }
  0xcb   : > { %v165_v42 = vrot.slane %v164_v39, 1  ;;  %v190_v43 = vrot.slane %v189_v40, 2  ;;  %v176_v44 = vrot.slane %v175_v41, 2 }
  0xcd   : > { %v191_v45 = vadd.f32 %v190_v43, %v189_v40  ;;  %v177_v46 = vadd.f32 %v176_v44, %v175_v41  ;;  %v166_v47 = vadd.f32 %v165_v42, %v164_v39 }
  0xcf   : > { %v192_v48 = vrot.slane %v191_v45, 1  ;;  %v178_v49 = vrot.slane %v177_v46, 1  ;;  %v167_v52 = vmul.f32 0.2989, %v166_v47 }
  0xd1   : > { %v193_v50 = vadd.f32 %v192_v48, %v191_v45  ;;  %v179_v51 = vadd.f32 %v178_v49, %v177_v46 }
  0xd3   : > { %v180_v53 = vmul.f32 0.587, %v179_v51  ;;  %v194_v54 = vmul.f32 0.114, %v193_v50 }
  0xd5   : > { %v181_v55 = vadd.f32 %v180_v53, %v167_v52 }
  0xd7   : > { %v195_v57 = vadd.f32 %v194_v54, %v181_v55 }
  0xd9   : > { %v196_v62 = vmul.f32 0.00390625, %v195_v57 }
  0xdb   : > { %v198_v63 = vmul.f32 %v197_v58, %v196_v62 }
  0xdd   : > { %v201_v0 = vadd.f32 %v200_v59, %v198_v63  ;;  %v205_v1 = vadd.f32 %v204_v61, %v198_v63  ;;  %v209_v2 = vadd.f32 %v208_v60, %v198_v63 }
  0xdf   : > { %v202_v3 = vmax.f32 %v201_v0, 0.0  ;;  %v206_v4 = vmax.f32 %v205_v1, 0.0  ;;  %v210_v5 = vmax.f32 %v209_v2, 0.0 }
  0xe1   : > { %v203_v6 = vmin.f32 %v202_v3, 1.0  ;;  %v207_v7 = vmin.f32 %v206_v4, 1.0  ;;  %v211_v8 = vmin.f32 %v210_v5, 1.0 }
  0xe3   : > { %v212_v9 = vsel %vm157_vm0, %v203_v6, %v207_v7 }
  0xe4   : > { %v214_v10 = vsel %vm213_vm1, %v212_v9, %v211_v8 }
  0xe5   : > { %215 = vst [vmem:[%s118_s26] sm:$0x3f] %v214_v10 }
  0xe6 PF: > { %s18_s14 = sadd.s32 1, %s309_s14  }
  0xe7   : > { %p15_p9 = scmp.ge.s32.totalorder %s18_s14, 4  }
  0xe9   :  { %17 = sbr.rel (!%p15_p9) target bundleno = 16 (0x10), region = 54 }

</bundles_post_ra>
